<compile_context>
chip_gen: v7x
topology: tpu7x:2x2x1
jax: 0.10.0
libtpu: 0.0.40
codegen_flags: <defaults>
</compile_context>

<pallas_src>
import jax
import jax.numpy as jnp
from jax.experimental import pallas as pl
from jax.experimental.pallas import tpu as pltpu


# -----------------------------------------------------------------------------
# Kernels
# -----------------------------------------------------------------------------

def _pe_add_tiled_kernel(x_ref, pe_ref, o_ref):
    # Batch dim squeezed: x_ref / pe_ref / o_ref are all (TS, D).
    o_ref[...] = x_ref[...] + pe_ref[...]


def _pe_add_fullpe_kernel(x_ref, pe_ref, o_ref):
    # x_ref/o_ref: (TS, D); pe_ref: full (S, D), VMEM-resident (one DMA total).
    # TS divides S (gated in the wrapper), so the slice never runs past pe and
    # the start is tile-aligned -> no layout fixups.
    ts = x_ref.shape[0]
    start = pl.multiple_of(pl.program_id(0) * ts, 8)
    o_ref[...] = x_ref[...] + pe_ref[pl.ds(start, ts), :]


def _pe_add_flat_kernel(x_ref, pe_ref, o_ref):
    # x_ref / o_ref: (B, TL); pe_ref: (1, TL) -> sublane broadcast over batch.
    o_ref[...] = x_ref[...] + pe_ref[...]


# -----------------------------------------------------------------------------
# Parameter setup (replicates the PyTorch __init__ double loop, vectorized)
# -----------------------------------------------------------------------------

def make_positional_encoding(d_model: int, seq_len: int,
                             dtype=jnp.float32) -> jnp.ndarray:
    i = jnp.arange(seq_len, dtype=jnp.float32)[:, None]           # (S, 1)
    j = jnp.arange(d_model, dtype=jnp.float32)[None, :]           # (1, D)
    denom = jnp.power(jnp.float32(10000.0), 2.0 * j / d_model)    # (1, D)
    angle = i / denom                                              # (S, D)
    j_int = jnp.arange(d_model)[None, :]
    pe = jnp.where(j_int % 2 == 0, jnp.sin(angle), jnp.cos(angle))
    # Build once in the model dtype so forward() never re-casts / re-writes it.
    return pe.astype(dtype)                                        # (S, D)


# -----------------------------------------------------------------------------
# Tiling / VMEM sizing helpers
# -----------------------------------------------------------------------------

def _tpu_vmem_capacity() -> int:
    try:
        return int(pltpu.get_tpu_info().vmem_capacity_bytes)
    except Exception:
        return 64 << 20  # conservative default (v7x per-core VMEM)


def _sublane_pack(itemsize: int) -> int:
    # Rows per packed vreg: 8 for f32, 16 for bf16, 32 for int8/fp8.
    return max(8, 32 // max(1, itemsize))


def _pick_seq_tile(S, D, itemsize, budget_bytes, n_bufs, max_seq_tile=None):
    """Largest sublane-pack-aligned seq tile fitting the byte budget,
    preferring one that divides S (no masked edge tile)."""
    pack = _sublane_pack(itemsize)
    ts = budget_bytes // (n_bufs * D * itemsize)
    if max_seq_tile is not None:
        ts = min(ts, max_seq_tile)
    if ts >= S:
        return S
    ts = max(pack, (ts // pack) * pack)
    for cand in range(ts, pack - 1, -pack):     # prefer a clean divisor of S
        if S % cand == 0:
            return cand
    return ts


# -----------------------------------------------------------------------------
# Forward
# -----------------------------------------------------------------------------

_PE_RESIDENT_BYTES = 4 << 20   # keep pe fully VMEM-resident below this size


def positional_encoding_forward(x: jnp.ndarray, pe: jnp.ndarray, *,
                                max_seq_tile: int | None = None,
                                pe_resident_bytes: int = _PE_RESIDENT_BYTES,
                                donate_x: bool = False) -> jnp.ndarray:
    """x: (B, S, D); pe: (>=S, D). Returns x + pe[:S] (inference dropout = id).

    Pass pe pre-sliced to (S, D) and already in x.dtype (make_positional_encoding
    does this) to avoid any per-call slice/convert HLO and the extra HBM write."""
    B, S, D = x.shape
    itemsize = x.dtype.itemsize
    pe_s = pe if (pe.shape[0] == S and pe.dtype == x.dtype) else pe[:S].astype(x.dtype)

    cap = _tpu_vmem_capacity()
    budget = max(8 << 20, int(cap * 0.35))      # ~22 MiB v7x, ~45 MiB v5e/v6e
    io_alias = {0: 0} if donate_x else {}

    if D % 128 == 0:
        # ---- lane-dense tiled path --------------------------------------
        pe_bytes = S * D * itemsize
        # pe fully resident -> only x/out are double-buffered (factor 4).
        ts_full = _pick_seq_tile(S, D, itemsize,
                                 max(budget - 2 * pe_bytes, budget // 2),
                                 n_bufs=4, max_seq_tile=max_seq_tile)
        use_full_pe = (pe_bytes <= pe_resident_bytes) and (S % ts_full == 0)

        if use_full_pe:
            ts = ts_full
            kernel = _pe_add_fullpe_kernel
            pe_spec = pl.BlockSpec((S, D), lambda s, b: (0, 0))
            live = 4 * ts * D * itemsize + 2 * pe_bytes
        else:
            ts = _pick_seq_tile(S, D, itemsize, budget, n_bufs=6,
                                max_seq_tile=max_seq_tile)
            kernel = _pe_add_tiled_kernel
            pe_spec = pl.BlockSpec((ts, D), lambda s, b: (s, 0))
            live = 6 * ts * D * itemsize
        vmem_limit = min(cap, live + (8 << 20))   # right-sized, not 0.6*cap

        return pl.pallas_call(
            kernel,
            out_shape=jax.ShapeDtypeStruct((B, S, D), x.dtype),
            grid_spec=pltpu.PrefetchScalarGridSpec(
                num_scalar_prefetch=0,
                # Batch innermost: pe block index is constant across
                # consecutive steps -> DMA skipped, pe HBM traffic is S*D
                # (not B*S*D).
                grid=(pl.cdiv(S, ts), B),
                in_specs=[
                    pl.BlockSpec((None, ts, D), lambda s, b: (b, s, 0)),  # x
                    pe_spec,                                              # pe
                ],
                out_specs=pl.BlockSpec((None, ts, D), lambda s, b: (b, s, 0)),
            ),
            compiler_params=pltpu.CompilerParams(
                # Megacore/2-TC split lands on the seq-tile axis (batch may be
                # tiny/odd); inner batch axis stays sequential so the pe
                # DMA-skip revisit holds within each core.
                dimension_semantics=("parallel", "arbitrary"),
                vmem_limit_bytes=vmem_limit,
            ),
            input_output_aliases=io_alias,
        )(x, pe_s)

    # ---- fallback path: D not a multiple of 128 (e.g. d_model=32 demo) ----
    # Flatten (S, D) onto the lane axis and tile it in 128-multiples so the
    # path is lane-dense, pipelined and VMEM-safe for large shapes.
    L = S * D
    x2 = x.reshape(B, L)
    pe2 = pe_s.reshape(1, L)
    if L % 128 == 0:
        tl = budget // (6 * max(B, 1) * itemsize)
        tl = min(L, max(128, (tl // 128) * 128))
        if tl < L:
            for cand in range(tl, 127, -128):   # prefer a divisor of L
                if L % cand == 0:
                    tl = cand
                    break
    else:
        tl = L   # full-extent lane dim (equal to the array dim is always legal)
    live = (4 * B + 2) * tl * itemsize
    out2 = pl.pallas_call(
        _pe_add_flat_kernel,
        out_shape=jax.ShapeDtypeStruct((B, L), x.dtype),
        grid=(pl.cdiv(L, tl),),
        in_specs=[
            pl.BlockSpec((B, tl), lambda l: (0, l)),
            pl.BlockSpec((1, tl), lambda l: (0, l)),
        ],
        out_specs=pl.BlockSpec((B, tl), lambda l: (0, l)),
        compiler_params=pltpu.CompilerParams(
            dimension_semantics=("parallel",),
            vmem_limit_bytes=min(cap, live + (8 << 20)),
        ),
        input_output_aliases=io_alias,
    )(x2, pe2)
    return out2.reshape(B, S, D)


# -----------------------------------------------------------------------------
# Demo / self-test
# -----------------------------------------------------------------------------

if __name__ == "__main__":
    key = jax.random.PRNGKey(0)
    k1, k2, k3 = jax.random.split(key, 3)

    # Case 1: the module's own small config (D=32 -> flat fallback path).
    batch, seq_len, d_model = 2, 8, 32
    dropout_p = 0.1  # inference: dropout is identity
    x = jax.random.normal(k1, (batch, seq_len, d_model), dtype=jnp.float32)
    pe = make_positional_encoding(d_model, seq_len)
    out = jax.block_until_ready(positional_encoding_forward(x, pe))
    ref = x + pe[None, :seq_len, :]
    assert out.shape == (batch, seq_len, d_model)
    assert jnp.allclose(out, ref, atol=1e-6, rtol=1e-6), "flat path mismatch"

    # Case 2: lane-dense D; small forced seq tile exercises the S-tiling +
    # VMEM-resident-pe fast path (in-kernel pe row slice).
    b2, s2, d2 = 2, 128, 256
    x2 = jax.random.normal(k2, (b2, s2, d2), dtype=jnp.float32)
    pe2 = make_positional_encoding(d2, s2)
    out2 = jax.block_until_ready(
        positional_encoding_forward(x2, pe2, max_seq_tile=32))
    ref2 = x2 + pe2[None, :s2, :]
    assert jnp.allclose(out2, ref2, atol=1e-6, rtol=1e-6), "full-pe path mismatch"

    # Case 3: force the tiled-pe branch (pe_resident_bytes=0) to exercise the
    # (ts, D)-tiled pe BlockSpec with the batch-innermost DMA-skip layout.
    b3, s3, d3 = 2, 64, 128
    x3 = jax.random.normal(k3, (b3, s3, d3), dtype=jnp.float32)
    pe3 = make_positional_encoding(d3, s3)
    out3 = jax.block_until_ready(
        positional_encoding_forward(x3, pe3, max_seq_tile=16,
                                    pe_resident_bytes=0))
    ref3 = x3 + pe3[None, :s3, :]
    assert jnp.allclose(out3, ref3, atol=1e-6, rtol=1e-6), "tiled-pe path mismatch"

    print("KERNEL_OK")
</pallas_src>

<mosaic_0001>
module attributes {stable_mosaic.version = 11 : i64} {
  func.func @_pe_add_flat_kernel(%arg0: i32, %arg1: memref<2x256xf32, #tpu.memory_space<vmem>>, %arg2: memref<1x256xf32, #tpu.memory_space<vmem>>, %arg3: memref<2x256xf32, #tpu.memory_space<vmem>>) attributes {dimension_semantics = [#tpu.dimension_semantics<parallel>], iteration_bounds = array<i64: 1>, scalar_prefetch = 0 : i64, scratch_operands = 0 : i64, tpu.core_type = #tpu.core_type<tc>, window_params = [{transform_indices = @transform_0, window_bounds = array<i64: 2, 256>}, {transform_indices = @transform_1, window_bounds = array<i64: 1, 256>}, {transform_indices = @transform_2, window_bounds = array<i64: 2, 256>}]} {
    %c0 = arith.constant 0 : index
    %c0_0 = arith.constant 0 : index
    %0 = vector.load %arg1[%c0, %c0_0] : memref<2x256xf32, #tpu.memory_space<vmem>>, vector<2x256xf32>
    %c0_1 = arith.constant 0 : index
    %c0_2 = arith.constant 0 : index
    %1 = vector.load %arg2[%c0_1, %c0_2] : memref<1x256xf32, #tpu.memory_space<vmem>>, vector<1x256xf32>
    %2 = vector.broadcast %1 : vector<1x256xf32> to vector<2x256xf32>
    %3 = arith.addf %0, %2 : vector<2x256xf32>
    %c0_3 = arith.constant 0 : index
    %c0_4 = arith.constant 0 : index
    %4 = vector.load %arg3[%c0_3, %c0_4] : memref<2x256xf32, #tpu.memory_space<vmem>>, vector<2x256xf32>
    tpu.vector_store %arg3[%c0_3, %c0_4], %3 {strides = array<i32>} : memref<2x256xf32, #tpu.memory_space<vmem>>, vector<2x256xf32>,
    return
  }
  func.func @transform_0(%arg0: i32) -> (i32, i32) {
    %c0_i32 = arith.constant 0 : i32
    %c0_i32_0 = arith.constant 0 : i32
    return %c0_i32, %arg0 : i32, i32
  }
  func.func @transform_1(%arg0: i32) -> (i32, i32) {
    %c0_i32 = arith.constant 0 : i32
    %c0_i32_0 = arith.constant 0 : i32
    return %c0_i32, %arg0 : i32, i32
  }
  func.func @transform_2(%arg0: i32) -> (i32, i32) {
    %c0_i32 = arith.constant 0 : i32
    %c0_i32_0 = arith.constant 0 : i32
    return %c0_i32, %arg0 : i32, i32
  }
}

</mosaic_0001>

<bundles_post_ra>
// kernel: tpu_custom_call.1
= control target key start
LH: loop header
LB: loop body
LE: loop exit
PB: predicated region body
PF: predicated region fallthrough
CT: control target
= control target key end

     0   :  { %7 = vsyncpa [#allocation3], 0  ;;  %s157_s0 = inlined_call_operand.hbm [shape: f32[2,256], index: 0, kind: input, shape index: {}]   ;;  %s158_s1 = inlined_call_operand.vmem [shape: f32[1,256], index: 1, kind: input, shape index: {}]   ;;  %s159_s2 = inlined_call_operand.hbm [shape: f32[2,256], index: 2, kind: output, shape index: {}]  }
   0x1   :  { %8 = vsyncpa [#allocation4], 0  ;;  %s112_s9 = smov [#allocation2]   ;;  %s64_s13 = scalar_lea.hbm %s157_s0, 64 }
   0x2   :  { %s15_s10 = sshll.u32 %s112_s9, 4  ;;  %p65_p0 = scmp.ne.s32.totalorder %s157_s0, %s64_s13  ;;  %s16_s10 = int_to_ptr.vmem [resolvable:$true] %s15_s10 }
   0x3   :  { %p68_p1 = scmp.lt.u32.totalorder %s64_s13, %s157_s0 }
   0x5   :  { %p70_p2 = pnand %p68_p1, %p65_p0 }
   0x7   :  { %73 = shalt.err (!%p70_p2)
}
   0x8   :  { %s74_s18 = scalar_lea.vmem %s16_s10, 64  ;;  %p79_p4 = scmp.lt.s32.totalorder %s16_s10, %s16_s10 }
   0x9   :  { %p75_p3 = scmp.ne.s32.totalorder %s16_s10, %s74_s18  ;;  %p80_p5 = scmp.lt.s32.totalorder %s74_s18, %s74_s18 }
   0xb   :  { %p81_p6 = por %p80_p5, %p79_p4 }
   0xd   :  { %p82_p7 = pnand %p81_p6, %p75_p3 }
   0xf   :  { %85 = shalt.err (!%p82_p7)
}
  0x10   :  { %18 = dma.hbm_to_vmem [thread:$0]  %s157_s0, 64, %s16_s10, [#allocation3]  }
  0x11   :  { %108 = dma.done.wait [#allocation3], 64  }
  0x12   :  { %109 = vsyncadd [#allocation3], 4294967232  ;;  %v27_v0 = vlaneseq  ;;  %v113_v1 = vmov 1983009808   ;;  %v25_v7 = vld [vmem:[%s158_s1] sm:$0x3] }
  0x13   :  { %v37_v2 = vunpack.c.l.s4 %v113_v1  ;;  %v24_v12 = vld [vmem:[#allocation2] sm:$0xf]  ;;  %s114_s23 = smov [#allocation5]  }
  0x14   :  { %v28_v3 = vshrl.u32 %v27_v0, 7  ;;  %s52_s0 = sshll.u32 %s114_s23, 4  ;;  %s53_s0 = int_to_ptr.vmem [resolvable:$true] %s52_s0 }
  0x15   :  { %v38_v6 = vunpack.c.0.s8 %v37_v2  ;;  %s86_s24 = scalar_lea.vmem %s53_s0, 64  ;;  %p91_p9 = scmp.lt.s32.totalorder %s53_s0, %s53_s0 }
  0x16   :  { %v29_v4 = vsub.s32 0, %v28_v3  ;;  %v33_v5 = vsub.s32 1, %v28_v3  ;;  %p87_p8 = scmp.ne.s32.totalorder %s53_s0, %s86_s24  ;;  %p92_p10 = scmp.lt.s32.totalorder %s86_s24, %s86_s24 }
  0x17   :  { %v41_v10 = vsub.s32 %v38_v6, %v28_v3 }
  0x18   :  { %v30_v8 = vrot.slane %v25_v7, %v29_v4  ;;  %v34_v9 = vrot.slane %v25_v7, %v33_v5  ;;  %p93_p11 = por %p92_p10, %p91_p9 }
  0x1a   :  { %v35_v11 = vcombine.low %v30_v8, %v34_v9  ;;  %p94_p12 = pnand %p93_p11, %p87_p8 }
  0x1c   :  { %v42_v13 = vrot.slane %v35_v11, %v41_v10 }
  0x1e   :  { %v44_v14 = vadd.f32 %v42_v13, %v24_v12 }
  0x20   :  { %45 = vst [vmem:[#allocation5] sm:$0xf] %v44_v14 }
  0x21   :  { %97 = shalt.err (!%p94_p12)
}
  0x22   :  { %s98_s26 = scalar_lea.hbm %s159_s2, 64 }
  0x23   :  { %p99_p13 = scmp.ne.s32.totalorder %s159_s2, %s98_s26  ;;  %p102_p0 = scmp.lt.u32.totalorder %s98_s26, %s159_s2 }
  0x25   :  { %p104_p1 = pnand %p102_p0, %p99_p13 }
  0x27   :  { %107 = shalt.err (!%p104_p1)
}
  0x28   :  { %55 = dma.vmem_to_hbm [thread:$0]  %s53_s0, 64, %s159_s2, [#allocation4]  }
  0x29   :  { %110 = dma.done.wait [#allocation4], 64  }
  0x2a   :  { %111 = vsyncadd [#allocation4], 4294967232 }
  0x2b   :  { %59 = vsyncpa [#allocation3], 1 }
  0x2c   :  { %60 = vsyncpa [#allocation4], 1 }

</bundles_post_ra>
